<compile_context>
chip_gen: v5e
topology: v5e:2x2
jax: 0.10.0
libtpu: 0.0.40
codegen_flags: <defaults>
</compile_context>

<pallas_src>
import functools

import jax
import jax.numpy as jnp
from jax.experimental import pallas as pl
from jax.experimental.pallas import tpu as pltpu

_LANE = 128


def _round_up(n, m):
    return ((n + m - 1) // m) * m


def _dnn_kernel(x_ref, w1_ref, b1_ref, w2_ref, b2_ref, w3_ref, b3_ref, o_ref):
    # Whole 3-layer forward for one batch tile, entirely in VMEM.
    x = x_ref[...]  # bf16 [block_b, in_dim]

    # fc1 + ReLU (MXU matmul, f32 accumulate)
    h1 = jnp.dot(x, w1_ref[...], preferred_element_type=jnp.float32) + b1_ref[...]
    h1 = jnp.maximum(h1, 0.0).astype(jnp.bfloat16)

    # fc2 + ReLU
    h2 = jnp.dot(h1, w2_ref[...], preferred_element_type=jnp.float32) + b2_ref[...]
    h2 = jnp.maximum(h2, 0.0).astype(jnp.bfloat16)

    # fc3 + Sigmoid (exp and approx reciprocal both go to the EUP slot)
    z3 = jnp.dot(h2, w3_ref[...], preferred_element_type=jnp.float32) + b3_ref[...]
    o_ref[...] = pl.reciprocal(1.0 + jnp.exp(-z3), approx=True).astype(o_ref.dtype)


@functools.partial(jax.jit, static_argnames=("block_b",))
def dnn_forward(x, w1, b1, w2, b2, w3, b3, *, block_b=256):
    """x: [B, input_size] float32; weights in [in, out] layout. Returns [B, 1] float32."""
    B, in_dim = x.shape
    h1 = w1.shape[1]
    h2 = w2.shape[1]
    out_dim = w3.shape[1]  # == 1 for this module

    # Lane-dense (multiple-of-128) padded feature widths; batch padded to the tile size.
    h1p = _round_up(h1, _LANE)
    h2p = _round_up(h2, _LANE)
    outp = _round_up(out_dim, _LANE)
    block_b = max(8, _round_up(block_b, 8))
    Bp = _round_up(B, block_b)

    # Zero-padding preserves the forward exactly: padded hidden units stay ReLU(0)=0,
    # padded batch rows / output columns are sliced off below.
    def pad2(a, rows, cols):
        return jnp.pad(a, ((0, rows - a.shape[0]), (0, cols - a.shape[1])))

    xp = pad2(x, Bp, in_dim).astype(jnp.bfloat16)
    w1p = pad2(w1, in_dim, h1p).astype(jnp.bfloat16)
    w2p = pad2(w2, h1p, h2p).astype(jnp.bfloat16)
    w3p = pad2(w3, h2p, outp).astype(jnp.bfloat16)
    b1p = pad2(b1, 1, h1p)
    b2p = pad2(b2, 1, h2p)
    b3p = pad2(b3, 1, outp)

    grid = (Bp // block_b,)

    out = pl.pallas_call(
        _dnn_kernel,
        out_shape=jax.ShapeDtypeStruct((Bp, outp), jnp.float32),
        grid_spec=pltpu.PrefetchScalarGridSpec(
            num_scalar_prefetch=0,
            grid=grid,
            in_specs=[
                # batch-tiled activations
                pl.BlockSpec((block_b, in_dim), lambda i: (i, 0)),
                # grid-invariant (constant index_map) parameter blocks
                pl.BlockSpec((in_dim, h1p), lambda i: (0, 0)),
                pl.BlockSpec((1, h1p), lambda i: (0, 0)),
                pl.BlockSpec((h1p, h2p), lambda i: (0, 0)),
                pl.BlockSpec((1, h2p), lambda i: (0, 0)),
                pl.BlockSpec((h2p, outp), lambda i: (0, 0)),
                pl.BlockSpec((1, outp), lambda i: (0, 0)),
            ],
            out_specs=pl.BlockSpec((block_b, outp), lambda i: (i, 0)),
        ),
        compiler_params=pltpu.CompilerParams(
            # Multi-step batch grid + "parallel" -> megacore sharding on v7x.
            dimension_semantics=("parallel",),
        ),
    )(xp, w1p, b1p, w2p, b2p, w3p, b3p)

    # NOTE: for very large hidden sizes, add a reduction grid axis over K and/or
    # single-buffer the invariant weight blocks to respect v7x's 64 MiB VMEM.
    return out[:B, :out_dim]


def init_params(key, input_size, hidden_size1, hidden_size2):
    """Deterministic init mimicking nn.Linear's uniform(-1/sqrt(fan_in), 1/sqrt(fan_in)).

    Weights are returned already transposed to [in, out] layout.
    """
    ks = jax.random.split(key, 6)

    def linear(kw, kb, fan_in, fan_out):
        bound = 1.0 / jnp.sqrt(jnp.float32(fan_in))
        w = jax.random.uniform(kw, (fan_in, fan_out), jnp.float32, -bound, bound)
        b = jax.random.uniform(kb, (1, fan_out), jnp.float32, -bound, bound)
        return w, b

    w1, b1 = linear(ks[0], ks[1], input_size, hidden_size1)
    w2, b2 = linear(ks[2], ks[3], hidden_size1, hidden_size2)
    w3, b3 = linear(ks[4], ks[5], hidden_size2, 1)
    return w1, b1, w2, b2, w3, b3


def reference_forward(x, w1, b1, w2, b2, w3, b3):
    """f32 reference mirroring the kernel's bf16-input / f32-accumulate matmuls."""
    bf = lambda a: a.astype(jnp.bfloat16).astype(jnp.float32)
    h1 = jnp.maximum(bf(x) @ bf(w1) + b1, 0.0)
    h2 = jnp.maximum(bf(h1) @ bf(w2) + b2, 0.0)
    return jax.nn.sigmoid(bf(h2) @ bf(w3) + b3)


if __name__ == "__main__":
    key = jax.random.PRNGKey(0)
    kx, kp = jax.random.split(key)

    # Small toy DNN shapes, with enough batch for a 2-step parallel grid (256-row tiles).
    B, input_size, hidden1, hidden2 = 512, 16, 32, 32
    x = jax.random.normal(kx, (B, input_size), jnp.float32)
    params = init_params(kp, input_size, hidden1, hidden2)

    out = dnn_forward(x, *params, block_b=256)  # grid = (2,) parallel batch tiles
    out = jax.block_until_ready(out)

    ref = reference_forward(x, *params)
    assert out.shape == (B, 1), out.shape
    assert jnp.allclose(out, ref, atol=1e-2, rtol=1e-2), "mismatch vs JAX reference"

    print("KERNEL_OK")
</pallas_src>

<mosaic_0001>
module attributes {stable_mosaic.version = 11 : i64} {
  func.func @_dnn_kernel(%arg0: i32, %arg1: memref<256x16xbf16, #tpu.memory_space<vmem>>, %arg2: memref<16x128xbf16, #tpu.memory_space<vmem>>, %arg3: memref<1x128xf32, #tpu.memory_space<vmem>>, %arg4: memref<128x128xbf16, #tpu.memory_space<vmem>>, %arg5: memref<1x128xf32, #tpu.memory_space<vmem>>, %arg6: memref<128x128xbf16, #tpu.memory_space<vmem>>, %arg7: memref<1x128xf32, #tpu.memory_space<vmem>>, %arg8: memref<256x128xf32, #tpu.memory_space<vmem>>) attributes {dimension_semantics = [#tpu.dimension_semantics<parallel>], iteration_bounds = array<i64: 2>, scalar_prefetch = 0 : i64, scratch_operands = 0 : i64, tpu.core_type = #tpu.core_type<tc>, window_params = [{transform_indices = @transform_0, window_bounds = array<i64: 256, 16>}, {pipeline_mode = #tpu.pipeline_mode<synchronous>, transform_indices = @transform_1, window_bounds = array<i64: 16, 128>}, {pipeline_mode = #tpu.pipeline_mode<synchronous>, transform_indices = @transform_2, window_bounds = array<i64: 1, 128>}, {pipeline_mode = #tpu.pipeline_mode<synchronous>, transform_indices = @transform_3, window_bounds = array<i64: 128, 128>}, {pipeline_mode = #tpu.pipeline_mode<synchronous>, transform_indices = @transform_4, window_bounds = array<i64: 1, 128>}, {pipeline_mode = #tpu.pipeline_mode<synchronous>, transform_indices = @transform_5, window_bounds = array<i64: 128, 128>}, {pipeline_mode = #tpu.pipeline_mode<synchronous>, transform_indices = @transform_6, window_bounds = array<i64: 1, 128>}, {transform_indices = @transform_7, window_bounds = array<i64: 256, 128>}]} {
    %c0 = arith.constant 0 : index
    %c0_0 = arith.constant 0 : index
    %0 = vector.load %arg1[%c0, %c0_0] : memref<256x16xbf16, #tpu.memory_space<vmem>>, vector<256x16xbf16>
    %c0_1 = arith.constant 0 : index
    %c0_2 = arith.constant 0 : index
    %1 = vector.load %arg2[%c0_1, %c0_2] : memref<16x128xbf16, #tpu.memory_space<vmem>>, vector<16x128xbf16>
    %cst = arith.constant dense<0.000000e+00> : vector<256x128xf32>
    %2 = tpu.matmul %0, %1, %cst {dimension_numbers = #tpu.dot_dimension_numbers<[1], [0], [0], [1], [0, 0, 1, 1], [], []>} : vector<256x16xbf16>, vector<16x128xbf16>, vector<256x128xf32> -> vector<256x128xf32>
    %c0_3 = arith.constant 0 : index
    %c0_4 = arith.constant 0 : index
    %3 = vector.load %arg3[%c0_3, %c0_4] : memref<1x128xf32, #tpu.memory_space<vmem>>, vector<1x128xf32>
    %4 = vector.broadcast %3 : vector<1x128xf32> to vector<256x128xf32>
    %5 = arith.addf %2, %4 : vector<256x128xf32>
    %cst_5 = arith.constant 0.000000e+00 : f32
    %6 = vector.broadcast %cst_5 : f32 to vector<256x128xf32>
    %7 = arith.maximumf %5, %6 : vector<256x128xf32>
    %8 = arith.truncf %7 : vector<256x128xf32> to vector<256x128xbf16>
    %c0_6 = arith.constant 0 : index
    %c0_7 = arith.constant 0 : index
    %9 = vector.load %arg4[%c0_6, %c0_7] : memref<128x128xbf16, #tpu.memory_space<vmem>>, vector<128x128xbf16>
    %cst_8 = arith.constant dense<0.000000e+00> : vector<256x128xf32>
    %10 = tpu.matmul %8, %9, %cst_8 {dimension_numbers = #tpu.dot_dimension_numbers<[1], [0], [0], [1], [0, 0, 1, 1], [], []>} : vector<256x128xbf16>, vector<128x128xbf16>, vector<256x128xf32> -> vector<256x128xf32>
    %c0_9 = arith.constant 0 : index
    %c0_10 = arith.constant 0 : index
    %11 = vector.load %arg5[%c0_9, %c0_10] : memref<1x128xf32, #tpu.memory_space<vmem>>, vector<1x128xf32>
    %12 = vector.broadcast %11 : vector<1x128xf32> to vector<256x128xf32>
    %13 = arith.addf %10, %12 : vector<256x128xf32>
    %cst_11 = arith.constant 0.000000e+00 : f32
    %14 = vector.broadcast %cst_11 : f32 to vector<256x128xf32>
    %15 = arith.maximumf %13, %14 : vector<256x128xf32>
    %16 = arith.truncf %15 : vector<256x128xf32> to vector<256x128xbf16>
    %c0_12 = arith.constant 0 : index
    %c0_13 = arith.constant 0 : index
    %17 = vector.load %arg6[%c0_12, %c0_13] : memref<128x128xbf16, #tpu.memory_space<vmem>>, vector<128x128xbf16>
    %cst_14 = arith.constant dense<0.000000e+00> : vector<256x128xf32>
    %18 = tpu.matmul %16, %17, %cst_14 {dimension_numbers = #tpu.dot_dimension_numbers<[1], [0], [0], [1], [0, 0, 1, 1], [], []>} : vector<256x128xbf16>, vector<128x128xbf16>, vector<256x128xf32> -> vector<256x128xf32>
    %c0_15 = arith.constant 0 : index
    %c0_16 = arith.constant 0 : index
    %19 = vector.load %arg7[%c0_15, %c0_16] : memref<1x128xf32, #tpu.memory_space<vmem>>, vector<1x128xf32>
    %20 = vector.broadcast %19 : vector<1x128xf32> to vector<256x128xf32>
    %21 = arith.addf %18, %20 : vector<256x128xf32>
    %cst_17 = arith.constant 0.000000e+00 : f32
    %22 = vector.broadcast %cst_17 : f32 to vector<256x128xf32>
    %23 = arith.subf %22, %21 : vector<256x128xf32>
    %24 = math.exp %23 : vector<256x128xf32>
    %cst_18 = arith.constant 1.000000e+00 : f32
    %25 = vector.broadcast %cst_18 : f32 to vector<256x128xf32>
    %26 = arith.addf %25, %24 : vector<256x128xf32>
    %27 = tpu.reciprocal %26 {approx = true} : vector<256x128xf32> -> vector<256x128xf32>
    %c0_19 = arith.constant 0 : index
    %c0_20 = arith.constant 0 : index
    %28 = vector.load %arg8[%c0_19, %c0_20] : memref<256x128xf32, #tpu.memory_space<vmem>>, vector<256x128xf32>
    tpu.vector_store %arg8[%c0_19, %c0_20], %27 {strides = array<i32>} : memref<256x128xf32, #tpu.memory_space<vmem>>, vector<256x128xf32>,
    return
  }
  func.func @transform_0(%arg0: i32) -> (i32, i32) {
    %c0_i32 = arith.constant 0 : i32
    %c0_i32_0 = arith.constant 0 : i32
    return %arg0, %c0_i32 : i32, i32
  }
  func.func @transform_1(%arg0: i32) -> (i32, i32) {
    %c0_i32 = arith.constant 0 : i32
    %c0_i32_0 = arith.constant 0 : i32
    %c0_i32_1 = arith.constant 0 : i32
    return %c0_i32, %c0_i32_0 : i32, i32
  }
  func.func @transform_2(%arg0: i32) -> (i32, i32) {
    %c0_i32 = arith.constant 0 : i32
    %c0_i32_0 = arith.constant 0 : i32
    %c0_i32_1 = arith.constant 0 : i32
    return %c0_i32, %c0_i32_0 : i32, i32
  }
  func.func @transform_3(%arg0: i32) -> (i32, i32) {
    %c0_i32 = arith.constant 0 : i32
    %c0_i32_0 = arith.constant 0 : i32
    %c0_i32_1 = arith.constant 0 : i32
    return %c0_i32, %c0_i32_0 : i32, i32
  }
  func.func @transform_4(%arg0: i32) -> (i32, i32) {
    %c0_i32 = arith.constant 0 : i32
    %c0_i32_0 = arith.constant 0 : i32
    %c0_i32_1 = arith.constant 0 : i32
    return %c0_i32, %c0_i32_0 : i32, i32
  }
  func.func @transform_5(%arg0: i32) -> (i32, i32) {
    %c0_i32 = arith.constant 0 : i32
    %c0_i32_0 = arith.constant 0 : i32
    %c0_i32_1 = arith.constant 0 : i32
    return %c0_i32, %c0_i32_0 : i32, i32
  }
  func.func @transform_6(%arg0: i32) -> (i32, i32) {
    %c0_i32 = arith.constant 0 : i32
    %c0_i32_0 = arith.constant 0 : i32
    %c0_i32_1 = arith.constant 0 : i32
    return %c0_i32, %c0_i32_0 : i32, i32
  }
  func.func @transform_7(%arg0: i32) -> (i32, i32) {
    %c0_i32 = arith.constant 0 : i32
    %c0_i32_0 = arith.constant 0 : i32
    return %arg0, %c0_i32 : i32, i32
  }
}

</mosaic_0001>

<bundles_post_ra>
// kernel: dnn_forward.1
= control target key start
LH: loop header
LB: loop body
LE: loop exit
PB: predicated region body
PF: predicated region fallthrough
CT: control target
= control target key end

     0   :  { %s1599_s24 = smov 0   ;;  %s1850_s0 = inlined_call_operand.vmem [shape: bf16[512,16], index: 0, kind: input, shape index: {}]   ;;  %s1851_s1 = inlined_call_operand.vmem [shape: bf16[16,128], index: 1, kind: input, shape index: {}]   ;;  %s1852_s2 = inlined_call_operand.vmem [shape: f32[1,128], index: 2, kind: input, shape index: {}]   ;;  %s1853_s3 = inlined_call_operand.vmem [shape: bf16[128,128], index: 3, kind: input, shape index: {}]   ;;  %s1854_s4 = inlined_call_operand.vmem [shape: f32[1,128], index: 4, kind: input, shape index: {}]   ;;  %s1855_s5 = inlined_call_operand.vmem [shape: bf16[128,128], index: 5, kind: input, shape index: {}]   ;;  %s1856_s6 = inlined_call_operand.vmem [shape: f32[1,128], index: 6, kind: input, shape index: {}]   ;;  %s1857_s7 = inlined_call_operand.vmem [shape: f32[512,128], index: 7, kind: output, shape index: {}]  }
   0x1 LB: > { %s1203_s25 = sadd.s32 4294967295, %s1557_s24   ;;  %p1207_p0 = scmp.ge.s32.totalorder %s1557_s24, 1  ;;  %s1557_s24 = sphi %s1599_s24, %s17_s24  }
   0x2   : > { %p238_p1 = scmp.lt.s32.totalorder %s1557_s24, 3 }
   0x4   : > { %p239_p2 = pnand %p1207_p0, %p238_p1 }
   0x5   : > { %s1208_s28 = sshll.u32 (!%p239_p2), %s1203_s25, 5 }
   0x6   : > { %242 = sbr.rel (%p239_p2) target bundleno = 704 (0x2c0), region = 48  ;;  %p271_p3 = scmp.lt.s32.totalorder (!%p239_p2), %s1208_s28, 63 }
   0xb   : > { %v1378_v0 = vld [vmem:[%s1851_s1] sm:$0xff]  ;;  %s1859_s28 = smov (!%p271_p3, %s1208_s28), 63  ;;  %vm407_vm0 = vcmask 130048   ;;  %v1386_v6 = vld [vmem:[%s1853_s3 + $0x38] sm:$0xff]  ;;  %v1385_v8 = vld [vmem:[%s1853_s3 + $0x30] sm:$0xff] }
   0xc   : > { %463 = vmatpush.bf16.msra.mxu0 %v1378_v0  ;;  %1395 = vmatpush.bf16.msra.mxu3 %v1378_v0  ;;  %s1209_s29 = sshll.u32 %s1859_s28, 2  ;;  %v1384_v9 = vld [vmem:[%s1853_s3 + $0x28] sm:$0xff]  ;;  %v1383_v10 = vld [vmem:[%s1853_s3 + $0x20] sm:$0xff]  ;;  %v1382_v11 = vld [vmem:[%s1853_s3 + $0x18] sm:$0xff] }
   0xd   : > { %s1616_s9 = scalar_lea.vmem %s1850_s0, %s1209_s29  ;;  %661 = vmatpush.bf16.msra.mxu1 %v1386_v6  ;;  %v1381_v13 = vld [vmem:[%s1853_s3 + $0x10] sm:$0xff]  ;;  %v1380_v14 = vld [vmem:[%s1853_s3 + $0x8] sm:$0xff]  ;;  %v1379_v15 = vld [vmem:[%s1853_s3] sm:$0xff]  ;;  %s1211_s29 = sshll.u32 %s1859_s28, 3 }
   0xe   : > { %v1362_v1 = vld [vmem:[%s1616_s9] sm:$0xff]  ;;  %v1363_v2 = vld [vmem:[%s1616_s9 + $0x8] sm:$0xff]  ;;  %v1364_v3 = vld [vmem:[%s1616_s9 + $0x10] sm:$0xff] }
   0xf   : > { %1280 = vmatmul.msk.bf16.vlgmr.msra.gmra.mxu0 %vm407_vm0, %v1362_v1  ;;  %v1365_v4 = vld [vmem:[%s1616_s9 + $0x18] sm:$0xff]  ;;  %v1366_v5 = vld [vmem:[%s1616_s9 + $0x20] sm:$0xff]  ;;  %v1367_v7 = vld [vmem:[%s1616_s9 + $0x28] sm:$0xff] }
  0x10   : > { %1396 = vmatpush.bf16.msrb.mxu3 %v1386_v6  ;;  %v1368_v12 = vld [vmem:[%s1616_s9 + $0x30] sm:$0xff]  ;;  %v1369_v16 = vld [vmem:[%s1616_s9 + $0x38] sm:$0xff]  ;;  %v1370_v17 = vld [vmem:[%s1616_s9 + $0x40] sm:$0xff] }
  0x11   : > { %662 = vmatpush.bf16.msra.mxu1 %v1385_v8  ;;  %v1662_v19 = vld [vmem:[%s1852_s2] ss:$0 sm:$0xff]  ;;  %v1371_v26 = vld [vmem:[%s1616_s9 + $0x48] sm:$0xff]  ;;  %v1372_v34 = vld [vmem:[%s1616_s9 + $0x50] sm:$0xff] }
  0x12   : > { %v1375_v36 = vld [vmem:[%s1616_s9 + $0x68] sm:$0xff]  ;;  %v1373_v43 = vld [vmem:[%s1616_s9 + $0x58] sm:$0xff]  ;;  %v1376_v45 = vld [vmem:[%s1616_s9 + $0x70] sm:$0xff] }
  0x13   : > { %1293 = vmatmul.msk.bf16.vlgmr.msra.gmra.mxu3 %vm407_vm0, %v1375_v36  ;;  %v1374_v52 = vld [vmem:[%s1616_s9 + $0x60] sm:$0xff]  ;;  %v1377_v54 = vld [vmem:[%s1616_s9 + $0x78] sm:$0xff]  ;;  %s1772_s9 = scalar_lea.vmem %s1857_s7, %s1211_s29 }
  0x14   : > { %1397 = vmatpush.bf16.msrb.mxu3 %v1385_v8  ;;  %v1394_v1 = vld [vmem:[%s1855_s5 + $0x38] sm:$0xff]  ;;  %v1391_v8 = vld [vmem:[%s1855_s5 + $0x20] sm:$0xff] }
  0x15   : > { %663 = vmatpush.bf16.msra.mxu1 %v1384_v9  ;;  %866 = vmatpush.bf16.msra.mxu2 %v1394_v1 }
  0x18   : > { %1398 = vmatpush.bf16.msrb.mxu3 %v1384_v9 }
  0x19   : > { %664 = vmatpush.bf16.msra.mxu1 %v1383_v10 }
  0x1c   : > { %1399 = vmatpush.bf16.msrb.mxu3 %v1383_v10 }
  0x1d   : > { %665 = vmatpush.bf16.msra.mxu1 %v1382_v11 }
  0x1f   : > { %1281 = vmatmul.msk.bf16.gmra.mxu0 %vm407_vm0, %v1363_v2 }
  0x20   : > { %1400 = vmatpush.bf16.msrb.mxu3 %v1382_v11 }
  0x21   : > { %666 = vmatpush.bf16.msra.mxu1 %v1381_v13 }
  0x23   : > { %1294 = vmatmul.msk.bf16.gmra.mxu3 %vm407_vm0, %v1376_v45 }
  0x24   : > { %1401 = vmatpush.bf16.msrb.mxu3 %v1381_v13 }
  0x25   : > { %667 = vmatpush.bf16.msra.mxu1 %v1380_v14 }
  0x28   : > { %1402 = vmatpush.bf16.msrb.mxu3 %v1380_v14 }
  0x29   : > { %668 = vmatpush.bf16.msra.mxu1 %v1379_v15 }
  0x2c   : > { %1403 = vmatpush.bf16.msrb.mxu3 %v1379_v15 }
  0x2f   : > { %1282 = vmatmul.msk.bf16.gmra.mxu0 %vm407_vm0, %v1364_v3 }
  0x30   : > { %1404 = vmatpush.bf16.msra.mxu3 %v1394_v1 }
  0x33   : > { %1295 = vmatmul.msk.bf16.gmra.mxu3 %vm407_vm0, %v1377_v54 }
  0x3f   : > { %1283 = vmatmul.msk.bf16.gmra.mxu0 %vm407_vm0, %v1365_v4 }
  0x4f   : > { %1284 = vmatmul.msk.bf16.gmra.mxu0 %vm407_vm0, %v1366_v5  ;;  %v1393_v5 = vld [vmem:[%s1855_s5 + $0x30] sm:$0xff] }
  0x50   : > { %867 = vmatpush.bf16.msra.mxu2 %v1393_v5  ;;  %1405 = vmatpush.bf16.msra.mxu3 %v1393_v5 }
  0x5f   : > { %1285 = vmatmul.msk.bf16.gmra.mxu0 %vm407_vm0, %v1367_v7  ;;  %v1392_v7 = vld [vmem:[%s1855_s5 + $0x28] sm:$0xff] }
  0x60   : > { %868 = vmatpush.bf16.msra.mxu2 %v1392_v7  ;;  %1406 = vmatpush.bf16.msra.mxu3 %v1392_v7 }
  0x64   : > { %869 = vmatpush.bf16.msra.mxu2 %v1391_v8  ;;  %1407 = vmatpush.bf16.msra.mxu3 %v1391_v8 }
  0x6f   : > { %1286 = vmatmul.msk.bf16.gmra.mxu0 %vm407_vm0, %v1368_v12  ;;  %v1390_v12 = vld [vmem:[%s1855_s5 + $0x18] sm:$0xff] }
  0x70   : > { %870 = vmatpush.bf16.msra.mxu2 %v1390_v12  ;;  %1408 = vmatpush.bf16.msra.mxu3 %v1390_v12 }
  0x7f   : > { %1287 = vmatmul.msk.bf16.gmra.mxu0 %vm407_vm0, %v1369_v16  ;;  %v1389_v16 = vld [vmem:[%s1855_s5 + $0x10] sm:$0xff] }
  0x80   : > { %871 = vmatpush.bf16.msra.mxu2 %v1389_v16  ;;  %1409 = vmatpush.bf16.msra.mxu3 %v1389_v16 }
  0x8c   : > { %v465_v18 = vpop.f32.mrf.mxu0 }
  0x8d   : > { %v466_v20 = vadd.f32 %v1662_v19, %v465_v18  ;;  %v1388_v18 = vld [vmem:[%s1855_s5 + $0x8] sm:$0xff] }
  0x8e   : > { %872 = vmatpush.bf16.msra.mxu2 %v1388_v18  ;;  %1410 = vmatpush.bf16.msra.mxu3 %v1388_v18 }
  0x8f   : > { %1288 = vmatmul.msk.bf16.gmra.mxu0 %vm407_vm0, %v1370_v17  ;;  %v545_v23 = vmax.f32 %v466_v20, 0.0  ;;  %v1387_v20 = vld [vmem:[%s1855_s5] sm:$0xff] }
  0x92   : > { %873 = vmatpush.bf16.msra.mxu2 %v1387_v20  ;;  %1411 = vmatpush.bf16.msra.mxu3 %v1387_v20 }
  0x94   : > { %v467_v21 = vpop.f32.mrf.mxu0 }
  0x95   : > { %v468_v22 = vadd.f32 %v1662_v19, %v467_v21 }
  0x97   : > { %v546_v24 = vmax.f32 %v468_v22, 0.0 }
  0x99   : > { %v577_v25 = vpack.c.bf16 %v546_v24, %v545_v23 }
  0x9b   : > { %669 = vmatmul.bf16.vlgmr.msra.gmra.mxu1 %v577_v25 }
  0x9c   : > { %v470_v27 = vpop.f32.mrf.mxu0 }
  0x9d   : > { %v471_v28 = vadd.f32 %v1662_v19, %v470_v27 }
  0x9f   : > { %1289 = vmatmul.msk.bf16.gmra.mxu0 %vm407_vm0, %v1371_v26  ;;  %v547_v31 = vmax.f32 %v471_v28, 0.0 }
  0xa4   : > { %v472_v29 = vpop.f32.mrf.mxu0 }
  0xa5   : > { %v473_v30 = vadd.f32 %v1662_v19, %v472_v29 }
  0xa7   : > { %v548_v32 = vmax.f32 %v473_v30, 0.0 }
  0xa9   : > { %v578_v33 = vpack.c.bf16 %v548_v32, %v547_v31 }
  0xab   : > { %674 = vmatmul.bf16.gmra.mxu1 %v578_v33 }
  0xac   : > { %v475_v35 = vpop.f32.mrf.mxu0 }
  0xad   : > { %v476_v37 = vadd.f32 %v1662_v19, %v475_v35  ;;  %v1724_v35 = vld [vmem:[%s1854_s4] ss:$0 sm:$0xff] }
  0xaf   : > { %1290 = vmatmul.msk.bf16.gmra.mxu0 %vm407_vm0, %v1372_v34  ;;  %v549_v40 = vmax.f32 %v476_v37, 0.0 }
  0xb4   : > { %v477_v38 = vpop.f32.mrf.mxu0 }
  0xb5   : > { %v478_v39 = vadd.f32 %v1662_v19, %v477_v38 }
  0xb7   : > { %v550_v41 = vmax.f32 %v478_v39, 0.0 }
  0xb9   : > { %v579_v42 = vpack.c.bf16 %v550_v41, %v549_v40 }
  0xbb   : > { %679 = vmatmul.bf16.gmra.mxu1 %v579_v42 }
  0xbc   : > { %v480_v44 = vpop.f32.mrf.mxu0 }
  0xbd   : > { %v481_v46 = vadd.f32 %v1662_v19, %v480_v44 }
  0xbf   : > { %1291 = vmatmul.msk.bf16.gmra.mxu0 %vm407_vm0, %v1373_v43  ;;  %v551_v49 = vmax.f32 %v481_v46, 0.0 }
  0xc4   : > { %v482_v47 = vpop.f32.mrf.mxu0 }
  0xc5   : > { %v483_v48 = vadd.f32 %v1662_v19, %v482_v47 }
  0xc7   : > { %v552_v50 = vmax.f32 %v483_v48, 0.0 }
  0xc9   : > { %v580_v51 = vpack.c.bf16 %v552_v50, %v551_v49 }
  0xcb   : > { %684 = vmatmul.bf16.gmra.mxu1 %v580_v51 }
  0xcc   : > { %v485_v53 = vpop.f32.mrf.mxu0 }
  0xcd   : > { %v486_v55 = vadd.f32 %v1662_v19, %v485_v53 }
  0xcf   : > { %1292 = vmatmul.msk.bf16.gmra.mxu0 %vm407_vm0, %v1374_v52  ;;  %v553_v58 = vmax.f32 %v486_v55, 0.0 }
  0xd4   : > { %v487_v56 = vpop.f32.mrf.mxu0 }
  0xd5   : > { %v488_v57 = vadd.f32 %v1662_v19, %v487_v56 }
  0xd7   : > { %v554_v59 = vmax.f32 %v488_v57, 0.0 }
  0xd9   : > { %v581_v60 = vpack.c.bf16 %v554_v59, %v553_v58 }
  0xdb   : > { %689 = vmatmul.bf16.gmra.mxu1 %v581_v60 }
  0xdc   : > { %v490_v61 = vpop.f32.mrf.mxu0 }
  0xdd   : > { %v491_v62 = vadd.f32 %v1662_v19, %v490_v61 }
  0xdf   : > { %v555_v2 = vmax.f32 %v491_v62, 0.0 }
  0xe4   : > { %v492_v63 = vpop.f32.mrf.mxu0 }
  0xe5   : > { %v493_v0 = vadd.f32 %v1662_v19, %v492_v63 }
  0xe7   : > { %v556_v3 = vmax.f32 %v493_v0, 0.0 }
  0xe9   : > { %v582_v4 = vpack.c.bf16 %v556_v3, %v555_v2 }
  0xeb   : > { %694 = vmatmul.bf16.gmra.mxu1 %v582_v4 }
  0xec   : > { %v495_v6 = vpop.f32.mrf.mxu0 }
  0xed   : > { %v496_v9 = vadd.f32 %v1662_v19, %v495_v6 }
  0xef   : > { %v557_v13 = vmax.f32 %v496_v9, 0.0 }
  0xf4   : > { %v497_v10 = vpop.f32.mrf.mxu0 }
  0xf5   : > { %v498_v11 = vadd.f32 %v1662_v19, %v497_v10 }
  0xf7   : > { %v558_v14 = vmax.f32 %v498_v11, 0.0 }
  0xf9   : > { %v583_v15 = vpack.c.bf16 %v558_v14, %v557_v13 }
  0xfb   : > { %699 = vmatmul.bf16.gmra.mxu1 %v583_v15  ;;  %v530_v15 = vpop.f32.mrf.mxu3 }
  0xfc   : > { %v500_v17 = vpop.f32.mrf.mxu0 }
  0xfd   : > { %v501_v21 = vadd.f32 %v1662_v19, %v500_v17 }
  0xff   : > { %v559_v24 = vmax.f32 %v501_v21, 0.0 }
 0x104   : > { %v502_v22 = vpop.f32.mrf.mxu0 }
 0x105   : > { %v503_v23 = vadd.f32 %v1662_v19, %v502_v22 }
 0x107   : > { %v560_v25 = vmax.f32 %v503_v23, 0.0 }
 0x109   : > { %v584_v26 = vpack.c.bf16 %v560_v25, %v559_v24 }
 0x10b   : > { %704 = vmatmul.bf16.gmra.mxu1 %v584_v26  ;;  %v532_v26 = vpop.f32.mrf.mxu3 }
 0x10c   : > { %v505_v27 = vpop.f32.mrf.mxu0 }
 0x10d   : > { %v506_v28 = vadd.f32 %v1662_v19, %v505_v27 }
 0x10f   : > { %v561_v31 = vmax.f32 %v506_v28, 0.0 }
 0x114   : > { %v507_v29 = vpop.f32.mrf.mxu0 }
 0x115   : > { %v508_v30 = vadd.f32 %v1662_v19, %v507_v29 }
 0x117   : > { %v562_v32 = vmax.f32 %v508_v30, 0.0 }
 0x118   : > { %v670_v33 = vpop.f32.mrf.mxu1 }
 0x119   : > { %v585_v34 = vpack.c.bf16 %v562_v32, %v561_v31  ;;  %v671_v37 = vadd.f32 %v1724_v35, %v670_v33  ;;  %v535_v33 = vpop.f32.mrf.mxu3 }
 0x11b   : > { %709 = vmatmul.bf16.gmra.mxu1 %v585_v34  ;;  %v750_v40 = vmax.f32 %v671_v37, 0.0  ;;  %v531_v34 = vadd.f32 %v1662_v19, %v530_v15 }
 0x11c   : > { %v510_v36 = vpop.f32.mrf.mxu0 }
 0x11d   : > { %v511_v41 = vadd.f32 %v1662_v19, %v510_v36  ;;  %v533_v36 = vadd.f32 %v1662_v19, %v532_v26 }
 0x11f   : > { %v563_v46 = vmax.f32 %v511_v41, 0.0  ;;  %v572_v41 = vmax.f32 %v533_v36, 0.0 }
 0x120   : > { %v672_v38 = vpop.f32.mrf.mxu1 }
 0x121   : > { %v673_v39 = vadd.f32 %v1724_v35, %v672_v38 }
 0x123   : > { %v751_v42 = vmax.f32 %v673_v39, 0.0 }
 0x124   : > { %v512_v43 = vpop.f32.mrf.mxu0 }
 0x125   : > { %v513_v44 = vadd.f32 %v1662_v19, %v512_v43  ;;  %v782_v45 = vpack.c.bf16 %v751_v42, %v750_v40  ;;  %v571_v40 = vmax.f32 %v531_v34, 0.0 }
 0x127   : > { %v564_v47 = vmax.f32 %v513_v44, 0.0  ;;  %874 = vmatmul.bf16.vlgmr.msra.gmra.mxu2 %v782_v45  ;;  %v590_v44 = vpack.c.bf16 %v572_v41, %v571_v40  ;;  %v537_v45 = vpop.f32.mrf.mxu3 }
 0x128   : > { %v675_v48 = vpop.f32.mrf.mxu1 }
 0x129   : > { %v586_v49 = vpack.c.bf16 %v564_v47, %v563_v46  ;;  %v676_v51 = vadd.f32 %v1724_v35, %v675_v48  ;;  %v536_v48 = vadd.f32 %v1662_v19, %v535_v33 }
 0x12b   : > { %714 = vmatmul.bf16.gmra.mxu1 %v586_v49  ;;  %v752_v54 = vmax.f32 %v676_v51, 0.0  ;;  %v538_v49 = vadd.f32 %v1662_v19, %v537_v45 }
 0x12c   : > { %v515_v50 = vpop.f32.mrf.mxu0 }
 0x12d   : > { %v516_v55 = vadd.f32 %v1662_v19, %v515_v50 }
 0x12f   : > { %v565_v60 = vmax.f32 %v516_v55, 0.0  ;;  %v574_v55 = vmax.f32 %v538_v49, 0.0 }
 0x130   : > { %v677_v52 = vpop.f32.mrf.mxu1 }
 0x131   : > { %v678_v53 = vadd.f32 %v1724_v35, %v677_v52 }
 0x133   : > { %v753_v56 = vmax.f32 %v678_v53, 0.0  ;;  %v540_v53 = vpop.f32.mrf.mxu3 }
 0x134   : > { %v517_v57 = vpop.f32.mrf.mxu0 }
 0x135   : > { %v518_v58 = vadd.f32 %v1662_v19, %v517_v57  ;;  %v783_v59 = vpack.c.bf16 %v753_v56, %v752_v54  ;;  %v573_v54 = vmax.f32 %v536_v48, 0.0 }
 0x137   : > { %v566_v61 = vmax.f32 %v518_v58, 0.0  ;;  %879 = vmatmul.bf16.gmra.mxu2 %v783_v59  ;;  %v591_v58 = vpack.c.bf16 %v574_v55, %v573_v54 }
 0x138   : > { %v680_v62 = vpop.f32.mrf.mxu1 }
 0x139   : > { %v587_v63 = vpack.c.bf16 %v566_v61, %v565_v60  ;;  %v681_v1 = vadd.f32 %v1724_v35, %v680_v62  ;;  %v541_v62 = vadd.f32 %v1662_v19, %v540_v53 }
 0x13b   : > { %719 = vmatmul.bf16.gmra.mxu1 %v587_v63  ;;  %v754_v4 = vmax.f32 %v681_v1, 0.0  ;;  %v542_v59 = vpop.f32.mrf.mxu3 }
 0x13c   : > { %v520_v0 = vpop.f32.mrf.mxu0  ;;  %v543_v63 = vadd.f32 %v1662_v19, %v542_v59 }
 0x13d   : > { %v521_v5 = vadd.f32 %v1662_v19, %v520_v0 }
 0x13f   : > { %v567_v10 = vmax.f32 %v521_v5, 0.0 }
 0x140   : > { %v682_v2 = vpop.f32.mrf.mxu1 }
 0x141   : > { %v683_v3 = vadd.f32 %v1724_v35, %v682_v2 }
 0x143   : > { %v755_v6 = vmax.f32 %v683_v3, 0.0  ;;  %v575_v3 = vmax.f32 %v541_v62, 0.0 }
 0x144   : > { %v522_v7 = vpop.f32.mrf.mxu0 }
 0x145   : > { %v523_v8 = vadd.f32 %v1662_v19, %v522_v7  ;;  %v784_v9 = vpack.c.bf16 %v755_v6, %v754_v4  ;;  %v576_v4 = vmax.f32 %v543_v63, 0.0 }
 0x147   : > { %v568_v11 = vmax.f32 %v523_v8, 0.0  ;;  %884 = vmatmul.bf16.gmra.mxu2 %v784_v9  ;;  %v592_v7 = vpack.c.bf16 %v576_v4, %v575_v3 }
 0x148   : > { %v685_v12 = vpop.f32.mrf.mxu1 }
 0x149   : > { %v588_v13 = vpack.c.bf16 %v568_v11, %v567_v10  ;;  %v686_v16 = vadd.f32 %v1724_v35, %v685_v12 }
 0x14b   : > { %724 = vmatmul.bf16.gmra.mxu1 %v588_v13  ;;  %v756_v20 = vmax.f32 %v686_v16, 0.0 }
 0x14c   : > { %v525_v14 = vpop.f32.mrf.mxu0 }
 0x14d   : > { %v526_v21 = vadd.f32 %v1662_v19, %v525_v14 }
 0x14f   : > { %v569_v27 = vmax.f32 %v526_v21, 0.0  ;;  %v1761_v21 = vld [vmem:[%s1856_s6] ss:$0 sm:$0xff] }
 0x150   : > { %v687_v17 = vpop.f32.mrf.mxu1 }
 0x151   : > { %v688_v18 = vadd.f32 %v1724_v35, %v687_v17 }
 0x153   : > { %v757_v22 = vmax.f32 %v688_v18, 0.0 }
 0x154   : > { %v527_v23 = vpop.f32.mrf.mxu0 }
 0x155   : > { %v528_v24 = vadd.f32 %v1662_v19, %v527_v23  ;;  %v785_v25 = vpack.c.bf16 %v757_v22, %v756_v20 }
 0x157   : > { %v570_v28 = vmax.f32 %v528_v24, 0.0  ;;  %889 = vmatmul.bf16.gmra.mxu2 %v785_v25 }
 0x158   : > { %v690_v29 = vpop.f32.mrf.mxu1 }
 0x159   : > { %v589_v30 = vpack.c.bf16 %v570_v28, %v569_v27  ;;  %v691_v31 = vadd.f32 %v1724_v35, %v690_v29 }
 0x15b   : > { %729 = vmatmul.bf16.vlgmr.msrb.gmra.mxu3 %v589_v30  ;;  %v758_v38 = vmax.f32 %v691_v31, 0.0 }
 0x160   : > { %v692_v32 = vpop.f32.mrf.mxu1 }
 0x161   : > { %v693_v37 = vadd.f32 %v1724_v35, %v692_v32 }
 0x163   : > { %v759_v39 = vmax.f32 %v693_v37, 0.0 }
 0x165   : > { %v786_v42 = vpack.c.bf16 %v759_v39, %v758_v38 }
 0x167   : > { %894 = vmatmul.bf16.gmra.mxu2 %v786_v42 }
 0x168   : > { %v695_v43 = vpop.f32.mrf.mxu1 }
 0x169   : > { %v696_v46 = vadd.f32 %v1724_v35, %v695_v43 }
 0x16b   : > { %734 = vmatmul.bf16.gmra.mxu3 %v590_v44  ;;  %v760_v51 = vmax.f32 %v696_v46, 0.0 }
 0x170   : > { %v697_v47 = vpop.f32.mrf.mxu1 }
 0x171   : > { %v698_v50 = vadd.f32 %v1724_v35, %v697_v47 }
 0x173   : > { %v761_v52 = vmax.f32 %v698_v50, 0.0 }
 0x175   : > { %v787_v56 = vpack.c.bf16 %v761_v52, %v760_v51 }
 0x177   : > { %899 = vmatmul.bf16.gmra.mxu2 %v787_v56 }
 0x178   : > { %v700_v57 = vpop.f32.mrf.mxu1 }
 0x179   : > { %v701_v60 = vadd.f32 %v1724_v35, %v700_v57 }
 0x17b   : > { %739 = vmatmul.bf16.gmra.mxu3 %v591_v58  ;;  %v762_v1 = vmax.f32 %v701_v60, 0.0 }
 0x180   : > { %v702_v61 = vpop.f32.mrf.mxu1 }
 0x181   : > { %v703_v0 = vadd.f32 %v1724_v35, %v702_v61 }
 0x183   : > { %v763_v2 = vmax.f32 %v703_v0, 0.0 }
 0x185   : > { %v788_v5 = vpack.c.bf16 %v763_v2, %v762_v1 }
 0x187   : > { %904 = vmatmul.bf16.gmra.mxu2 %v788_v5 }
 0x188   : > { %v705_v6 = vpop.f32.mrf.mxu1 }
 0x189   : > { %v706_v8 = vadd.f32 %v1724_v35, %v705_v6 }
 0x18b   : > { %744 = vmatmul.bf16.gmra.mxu3 %v592_v7  ;;  %v764_v11 = vmax.f32 %v706_v8, 0.0 }
 0x190   : > { %v707_v9 = vpop.f32.mrf.mxu1 }
 0x191   : > { %v708_v10 = vadd.f32 %v1724_v35, %v707_v9 }
 0x193   : > { %v765_v12 = vmax.f32 %v708_v10, 0.0 }
 0x195   : > { %v789_v13 = vpack.c.bf16 %v765_v12, %v764_v11 }
 0x197   : > { %909 = vmatmul.bf16.gmra.mxu2 %v789_v13 }
 0x198   : > { %v710_v19 = vpop.f32.mrf.mxu1 }
 0x199   : > { %v711_v14 = vadd.f32 %v1724_v35, %v710_v19 }
 0x19b   : > { %v766_v17 = vmax.f32 %v711_v14, 0.0 }
 0x1a0   : > { %v712_v15 = vpop.f32.mrf.mxu1 }
 0x1a1   : > { %v713_v16 = vadd.f32 %v1724_v35, %v712_v15 }
 0x1a3   : > { %v767_v18 = vmax.f32 %v713_v16, 0.0 }
 0x1a5   : > { %v790_v20 = vpack.c.bf16 %v767_v18, %v766_v17 }
 0x1a7   : > { %914 = vmatmul.bf16.gmra.mxu2 %v790_v20 }
 0x1a8   : > { %v715_v22 = vpop.f32.mrf.mxu1 }
 0x1a9   : > { %v716_v26 = vadd.f32 %v1724_v35, %v715_v22 }
 0x1aa   : > { %v875_v23 = vpop.f32.mrf.mxu2 }
 0x1ab   : > { %v876_v24 = vadd.f32 %v1761_v21, %v875_v23  ;;  %v768_v31 = vmax.f32 %v716_v26, 0.0 }
 0x1ad   : > { %v955_v25 = vsub.f32 0.0, %v876_v24 }
 0x1af   : > { %v987_v27 = vmul.f32 1.442695, %v955_v25 }
 0x1b0   : > { %v717_v28 = vpop.f32.mrf.mxu1 }
 0x1b1   : > { %1423 = vpow2.f32 %v987_v27  ;;  %v718_v29 = vadd.f32 %v1724_v35, %v717_v28 }
 0x1b2   : > { %v877_v30 = vpop.f32.mrf.mxu2 }
 0x1b3   : > { %v769_v32 = vmax.f32 %v718_v29, 0.0  ;;  %v878_v33 = vadd.f32 %v1761_v21, %v877_v30 }
 0x1b5   : > { %v956_v34 = vsub.f32 0.0, %v878_v33  ;;  %v791_v36 = vpack.c.bf16 %v769_v32, %v768_v31 }
 0x1b7   : > { %v1424_v37 = vpop.eup %1423  ;;  %v989_v38 = vmul.f32 1.442695, %v956_v34  ;;  %919 = vmatmul.bf16.gmra.mxu2 %v791_v36 }
 0x1b8   : > { %v1051_v39 = vadd.f32 1.0, %v1424_v37  ;;  %v720_v40 = vpop.f32.mrf.mxu1 }
 0x1b9   : > { %1425 = vpow2.f32 %v989_v38  ;;  %v721_v45 = vadd.f32 %v1724_v35, %v720_v40 }
 0x1ba   : > { %1427 = vrcp.f32 %v1051_v39  ;;  %v880_v41 = vpop.f32.mrf.mxu2 }
 0x1bb   : > { %v881_v42 = vadd.f32 %v1761_v21, %v880_v41  ;;  %v770_v52 = vmax.f32 %v721_v45, 0.0 }
 0x1bd   : > { %v957_v43 = vsub.f32 0.0, %v881_v42 }
 0x1bf   : > { %v1426_v44 = vpop.eup %1425  ;;  %v991_v46 = vmul.f32 1.442695, %v957_v43 }
 0x1c0   : > { %v1428_v47 = vpop.eup %1427  ;;  %v1052_v48 = vadd.f32 1.0, %v1426_v44  ;;  %v722_v49 = vpop.f32.mrf.mxu1 }
 0x1c1   : > { %1115 = vst [vmem:[%s1772_s9] sm:$0xff] %v1428_v47  ;;  %1429 = vpow2.f32 %v991_v46  ;;  %v723_v50 = vadd.f32 %v1724_v35, %v722_v49 }
 0x1c2   : > { %1431 = vrcp.f32 %v1052_v48  ;;  %v882_v51 = vpop.f32.mrf.mxu2 }
 0x1c3   : > { %v771_v53 = vmax.f32 %v723_v50, 0.0  ;;  %v883_v54 = vadd.f32 %v1761_v21, %v882_v51 }
 0x1c5   : > { %v958_v55 = vsub.f32 0.0, %v883_v54  ;;  %v792_v56 = vpack.c.bf16 %v771_v53, %v770_v52 }
 0x1c7   : > { %v1430_v57 = vpop.eup %1429  ;;  %v993_v58 = vmul.f32 1.442695, %v958_v55  ;;  %924 = vmatmul.bf16.gmra.mxu2 %v792_v56 }
 0x1c8   : > { %v1432_v59 = vpop.eup %1431  ;;  %v1053_v60 = vadd.f32 1.0, %v1430_v57  ;;  %v725_v61 = vpop.f32.mrf.mxu1 }
 0x1c9   : > { %1116 = vst [vmem:[%s1772_s9 + $0x8] sm:$0xff] %v1432_v59  ;;  %1433 = vpow2.f32 %v993_v58  ;;  %v726_v2 = vadd.f32 %v1724_v35, %v725_v61 }
 0x1ca   : > { %1435 = vrcp.f32 %v1053_v60  ;;  %v885_v62 = vpop.f32.mrf.mxu2 }
 0x1cb   : > { %v886_v63 = vadd.f32 %v1761_v21, %v885_v62  ;;  %v772_v9 = vmax.f32 %v726_v2, 0.0 }
 0x1cd   : > { %v959_v0 = vsub.f32 0.0, %v886_v63 }
 0x1cf   : > { %v1434_v1 = vpop.eup %1433  ;;  %v995_v3 = vmul.f32 1.442695, %v959_v0 }
 0x1d0   : > { %v1436_v4 = vpop.eup %1435  ;;  %v1054_v5 = vadd.f32 1.0, %v1434_v1  ;;  %v727_v6 = vpop.f32.mrf.mxu1 }
 0x1d1   : > { %1117 = vst [vmem:[%s1772_s9 + $0x10] sm:$0xff] %v1436_v4  ;;  %1437 = vpow2.f32 %v995_v3  ;;  %v728_v7 = vadd.f32 %v1724_v35, %v727_v6 }
 0x1d2   : > { %1439 = vrcp.f32 %v1054_v5  ;;  %v887_v8 = vpop.f32.mrf.mxu2 }
 0x1d3   : > { %v773_v10 = vmax.f32 %v728_v7, 0.0  ;;  %v888_v11 = vadd.f32 %v1761_v21, %v887_v8 }
 0x1d5   : > { %v960_v12 = vsub.f32 0.0, %v888_v11  ;;  %v793_v13 = vpack.c.bf16 %v773_v10, %v772_v9 }
 0x1d7   : > { %v1438_v19 = vpop.eup %1437  ;;  %v997_v14 = vmul.f32 1.442695, %v960_v12  ;;  %929 = vmatmul.bf16.gmra.mxu2 %v793_v13 }
 0x1d8   : > { %v1440_v15 = vpop.eup %1439  ;;  %v1055_v16 = vadd.f32 1.0, %v1438_v19 }
 0x1d9   : > { %1118 = vst [vmem:[%s1772_s9 + $0x18] sm:$0xff] %v1440_v15  ;;  %1441 = vpow2.f32 %v997_v14 }
 0x1da   : > { %1443 = vrcp.f32 %v1055_v16  ;;  %v890_v17 = vpop.f32.mrf.mxu2 }
 0x1db   : > { %v891_v18 = vadd.f32 %v1761_v21, %v890_v17 }
 0x1dd   : > { %v961_v20 = vsub.f32 0.0, %v891_v18 }
 0x1de   : > { %v730_v22 = vpop.f32.mrf.mxu3 }
 0x1df   : > { %v1442_v23 = vpop.eup %1441  ;;  %v999_v24 = vmul.f32 1.442695, %v961_v20  ;;  %v731_v29 = vadd.f32 %v1724_v35, %v730_v22 }
 0x1e0   : > { %v1444_v25 = vpop.eup %1443  ;;  %v1056_v26 = vadd.f32 1.0, %v1442_v23 }
 0x1e1   : > { %1119 = vst [vmem:[%s1772_s9 + $0x20] sm:$0xff] %v1444_v25  ;;  %1445 = vpow2.f32 %v999_v24  ;;  %v774_v38 = vmax.f32 %v731_v29, 0.0 }
 0x1e2   : > { %1447 = vrcp.f32 %v1056_v26  ;;  %v892_v27 = vpop.f32.mrf.mxu2 }
 0x1e3   : > { %v893_v28 = vadd.f32 %v1761_v21, %v892_v27 }
 0x1e5   : > { %v962_v30 = vsub.f32 0.0, %v893_v28 }
 0x1e6   : > { %v732_v31 = vpop.f32.mrf.mxu3 }
 0x1e7   : > { %v1446_v32 = vpop.eup %1445  ;;  %v1001_v33 = vmul.f32 1.442695, %v962_v30  ;;  %v733_v34 = vadd.f32 %v1724_v35, %v732_v31 }
 0x1e8   : > { %v1448_v36 = vpop.eup %1447  ;;  %v1057_v37 = vadd.f32 1.0, %v1446_v32 }
 0x1e9   : > { %1120 = vst [vmem:[%s1772_s9 + $0x28] sm:$0xff] %v1448_v36  ;;  %1449 = vpow2.f32 %v1001_v33  ;;  %v775_v39 = vmax.f32 %v733_v34, 0.0 }
 0x1ea   : > { %1451 = vrcp.f32 %v1057_v37  ;;  %v895_v40 = vpop.f32.mrf.mxu2 }
 0x1eb   : > { %v794_v41 = vpack.c.bf16 %v775_v39, %v774_v38  ;;  %v896_v42 = vadd.f32 %v1761_v21, %v895_v40 }
 0x1ed   : > { %v963_v43 = vsub.f32 0.0, %v896_v42  ;;  %934 = vmatmul.bf16.vlgmr.msra.gmra.mxu3 %v794_v41 }
 0x1ee   : > { %v735_v44 = vpop.f32.mrf.mxu3 }
 0x1ef   : > { %v1450_v45 = vpop.eup %1449  ;;  %v1003_v46 = vmul.f32 1.442695, %v963_v43  ;;  %v736_v51 = vadd.f32 %v1724_v35, %v735_v44 }
 0x1f0   : > { %v1452_v47 = vpop.eup %1451  ;;  %v1058_v48 = vadd.f32 1.0, %v1450_v45 }
 0x1f1   : > { %1121 = vst [vmem:[%s1772_s9 + $0x30] sm:$0xff] %v1452_v47  ;;  %1453 = vpow2.f32 %v1003_v46  ;;  %v776_v59 = vmax.f32 %v736_v51, 0.0 }
 0x1f2   : > { %1455 = vrcp.f32 %v1058_v48  ;;  %v897_v49 = vpop.f32.mrf.mxu2 }
 0x1f3   : > { %v898_v50 = vadd.f32 %v1761_v21, %v897_v49 }
 0x1f5   : > { %v964_v52 = vsub.f32 0.0, %v898_v50 }
 0x1f6   : > { %v737_v53 = vpop.f32.mrf.mxu3 }
 0x1f7   : > { %v1454_v54 = vpop.eup %1453  ;;  %v1005_v55 = vmul.f32 1.442695, %v964_v52  ;;  %v738_v56 = vadd.f32 %v1724_v35, %v737_v53 }
 0x1f8   : > { %v1456_v57 = vpop.eup %1455  ;;  %v1059_v58 = vadd.f32 1.0, %v1454_v54 }
 0x1f9   : > { %1122 = vst [vmem:[%s1772_s9 + $0x38] sm:$0xff] %v1456_v57  ;;  %1457 = vpow2.f32 %v1005_v55  ;;  %v777_v60 = vmax.f32 %v738_v56, 0.0 }
 0x1fa   : > { %1459 = vrcp.f32 %v1059_v58  ;;  %v900_v61 = vpop.f32.mrf.mxu2 }
 0x1fb   : > { %v901_v62 = vadd.f32 %v1761_v21, %v900_v61  ;;  %v795_v63 = vpack.c.bf16 %v777_v60, %v776_v59 }
 0x1fd   : > { %v965_v0 = vsub.f32 0.0, %v901_v62  ;;  %939 = vmatmul.bf16.gmra.mxu3 %v795_v63 }
 0x1fe   : > { %v740_v1 = vpop.f32.mrf.mxu3 }
 0x1ff   : > { %v1458_v2 = vpop.eup %1457  ;;  %v1007_v3 = vmul.f32 1.442695, %v965_v0  ;;  %v741_v8 = vadd.f32 %v1724_v35, %v740_v1 }
 0x200   : > { %v1460_v4 = vpop.eup %1459  ;;  %v1060_v5 = vadd.f32 1.0, %v1458_v2 }
 0x201   : > { %1123 = vst [vmem:[%s1772_s9 + $0x40] sm:$0xff] %v1460_v4  ;;  %1461 = vpow2.f32 %v1007_v3  ;;  %v778_v15 = vmax.f32 %v741_v8, 0.0 }
 0x202   : > { %1463 = vrcp.f32 %v1060_v5  ;;  %v902_v6 = vpop.f32.mrf.mxu2 }
 0x203   : > { %v903_v7 = vadd.f32 %v1761_v21, %v902_v6 }
 0x205   : > { %v966_v9 = vsub.f32 0.0, %v903_v7 }
 0x206   : > { %v742_v10 = vpop.f32.mrf.mxu3 }
 0x207   : > { %v1462_v11 = vpop.eup %1461  ;;  %v1009_v12 = vmul.f32 1.442695, %v966_v9  ;;  %v743_v13 = vadd.f32 %v1724_v35, %v742_v10 }
 0x208   : > { %v1464_v19 = vpop.eup %1463  ;;  %v1061_v14 = vadd.f32 1.0, %v1462_v11 }
 0x209   : > { %1124 = vst [vmem:[%s1772_s9 + $0x48] sm:$0xff] %v1464_v19  ;;  %1465 = vpow2.f32 %v1009_v12  ;;  %v779_v16 = vmax.f32 %v743_v13, 0.0 }
 0x20a   : > { %1467 = vrcp.f32 %v1061_v14  ;;  %v905_v17 = vpop.f32.mrf.mxu2 }
 0x20b   : > { %v906_v18 = vadd.f32 %v1761_v21, %v905_v17  ;;  %v796_v20 = vpack.c.bf16 %v779_v16, %v778_v15 }
 0x20d   : > { %v967_v22 = vsub.f32 0.0, %v906_v18  ;;  %944 = vmatmul.bf16.gmra.mxu3 %v796_v20 }
 0x20e   : > { %v745_v23 = vpop.f32.mrf.mxu3 }
 0x20f   : > { %v1466_v24 = vpop.eup %1465  ;;  %v1011_v25 = vmul.f32 1.442695, %v967_v22  ;;  %v746_v30 = vadd.f32 %v1724_v35, %v745_v23 }
 0x210   : > { %v1468_v26 = vpop.eup %1467  ;;  %v1062_v27 = vadd.f32 1.0, %v1466_v24 }
 0x211   : > { %1125 = vst [vmem:[%s1772_s9 + $0x50] sm:$0xff] %v1468_v26  ;;  %1469 = vpow2.f32 %v1011_v25  ;;  %v780_v39 = vmax.f32 %v746_v30, 0.0 }
 0x212   : > { %1471 = vrcp.f32 %v1062_v27  ;;  %v907_v28 = vpop.f32.mrf.mxu2 }
 0x213   : > { %v908_v29 = vadd.f32 %v1761_v21, %v907_v28 }
 0x215   : > { %v968_v31 = vsub.f32 0.0, %v908_v29 }
 0x216   : > { %v747_v32 = vpop.f32.mrf.mxu3 }
 0x217   : > { %v1470_v33 = vpop.eup %1469  ;;  %v1013_v34 = vmul.f32 1.442695, %v968_v31  ;;  %v748_v36 = vadd.f32 %v1724_v35, %v747_v32 }
 0x218   : > { %v1472_v37 = vpop.eup %1471  ;;  %v1063_v38 = vadd.f32 1.0, %v1470_v33 }
 0x219   : > { %1126 = vst [vmem:[%s1772_s9 + $0x58] sm:$0xff] %v1472_v37  ;;  %1473 = vpow2.f32 %v1013_v34  ;;  %v781_v40 = vmax.f32 %v748_v36, 0.0 }
 0x21a   : > { %1475 = vrcp.f32 %v1063_v38  ;;  %v910_v41 = vpop.f32.mrf.mxu2 }
 0x21b   : > { %v911_v42 = vadd.f32 %v1761_v21, %v910_v41  ;;  %v797_v43 = vpack.c.bf16 %v781_v40, %v780_v39 }
 0x21d   : > { %v969_v44 = vsub.f32 0.0, %v911_v42  ;;  %949 = vmatmul.bf16.gmra.mxu3 %v797_v43 }
 0x21f   : > { %v1474_v45 = vpop.eup %1473  ;;  %v1015_v46 = vmul.f32 1.442695, %v969_v44 }
 0x220   : > { %v1476_v47 = vpop.eup %1475  ;;  %v1064_v48 = vadd.f32 1.0, %v1474_v45 }
 0x221   : > { %1127 = vst [vmem:[%s1772_s9 + $0x60] sm:$0xff] %v1476_v47  ;;  %1477 = vpow2.f32 %v1015_v46 }
 0x222   : > { %1479 = vrcp.f32 %v1064_v48  ;;  %v912_v35 = vpop.f32.mrf.mxu2 }
 0x223   : > { %v913_v49 = vadd.f32 %v1761_v21, %v912_v35 }
 0x225   : > { %v970_v50 = vsub.f32 0.0, %v913_v49 }
 0x227   : > { %v1478_v51 = vpop.eup %1477  ;;  %v1017_v52 = vmul.f32 1.442695, %v970_v50 }
 0x228   : > { %v1480_v53 = vpop.eup %1479  ;;  %v1065_v54 = vadd.f32 1.0, %v1478_v51 }
 0x229   : > { %1128 = vst [vmem:[%s1772_s9 + $0x68] sm:$0xff] %v1480_v53  ;;  %1481 = vpow2.f32 %v1017_v52 }
 0x22a   : > { %1483 = vrcp.f32 %v1065_v54  ;;  %v915_v55 = vpop.f32.mrf.mxu2 }
 0x22b   : > { %v916_v56 = vadd.f32 %v1761_v21, %v915_v55 }
 0x22d   : > { %v971_v57 = vsub.f32 0.0, %v916_v56 }
 0x22f   : > { %v1482_v58 = vpop.eup %1481  ;;  %v1019_v59 = vmul.f32 1.442695, %v971_v57 }
 0x230   : > { %v1484_v60 = vpop.eup %1483  ;;  %v1066_v61 = vadd.f32 1.0, %v1482_v58 }
 0x231   : > { %1129 = vst [vmem:[%s1772_s9 + $0x70] sm:$0xff] %v1484_v60  ;;  %1485 = vpow2.f32 %v1019_v59 }
 0x232   : > { %1487 = vrcp.f32 %v1066_v61  ;;  %v917_v62 = vpop.f32.mrf.mxu2 }
 0x233   : > { %v918_v63 = vadd.f32 %v1761_v21, %v917_v62 }
 0x235   : > { %v972_v0 = vsub.f32 0.0, %v918_v63 }
 0x237   : > { %v1486_v1 = vpop.eup %1485  ;;  %v1021_v2 = vmul.f32 1.442695, %v972_v0 }
 0x238   : > { %v1488_v3 = vpop.eup %1487  ;;  %v1067_v4 = vadd.f32 1.0, %v1486_v1 }
 0x239   : > { %1130 = vst [vmem:[%s1772_s9 + $0x78] sm:$0xff] %v1488_v3  ;;  %1489 = vpow2.f32 %v1021_v2 }
 0x23a   : > { %1491 = vrcp.f32 %v1067_v4  ;;  %v920_v5 = vpop.f32.mrf.mxu2 }
 0x23b   : > { %v921_v6 = vadd.f32 %v1761_v21, %v920_v5 }
 0x23d   : > { %v973_v7 = vsub.f32 0.0, %v921_v6 }
 0x23f   : > { %v1490_v8 = vpop.eup %1489  ;;  %v1023_v9 = vmul.f32 1.442695, %v973_v7 }
 0x240   : > { %v1492_v10 = vpop.eup %1491  ;;  %v1068_v11 = vadd.f32 1.0, %v1490_v8 }
 0x241   : > { %1131 = vst [vmem:[%s1772_s9 + $0x80] sm:$0xff] %v1492_v10  ;;  %1493 = vpow2.f32 %v1023_v9 }
 0x242   : > { %1495 = vrcp.f32 %v1068_v11  ;;  %v922_v12 = vpop.f32.mrf.mxu2 }
 0x243   : > { %v923_v13 = vadd.f32 %v1761_v21, %v922_v12 }
 0x245   : > { %v974_v19 = vsub.f32 0.0, %v923_v13 }
 0x247   : > { %v1494_v14 = vpop.eup %1493  ;;  %v1025_v15 = vmul.f32 1.442695, %v974_v19 }
 0x248   : > { %v1496_v16 = vpop.eup %1495  ;;  %v1069_v17 = vadd.f32 1.0, %v1494_v14 }
 0x249   : > { %1132 = vst [vmem:[%s1772_s9 + $0x88] sm:$0xff] %v1496_v16  ;;  %1497 = vpow2.f32 %v1025_v15 }
 0x24a   : > { %1499 = vrcp.f32 %v1069_v17  ;;  %v925_v18 = vpop.f32.mrf.mxu2 }
 0x24b   : > { %v926_v20 = vadd.f32 %v1761_v21, %v925_v18 }
 0x24d   : > { %v975_v22 = vsub.f32 0.0, %v926_v20 }
 0x24f   : > { %v1498_v23 = vpop.eup %1497  ;;  %v1027_v24 = vmul.f32 1.442695, %v975_v22 }
 0x250   : > { %v1500_v25 = vpop.eup %1499  ;;  %v1070_v26 = vadd.f32 1.0, %v1498_v23 }
 0x251   : > { %1133 = vst [vmem:[%s1772_s9 + $0x90] sm:$0xff] %v1500_v25  ;;  %1501 = vpow2.f32 %v1027_v24 }
 0x252   : > { %1503 = vrcp.f32 %v1070_v26  ;;  %v927_v27 = vpop.f32.mrf.mxu2 }
 0x253   : > { %v928_v28 = vadd.f32 %v1761_v21, %v927_v27 }
 0x255   : > { %v976_v29 = vsub.f32 0.0, %v928_v28 }
 0x257   : > { %v1502_v30 = vpop.eup %1501  ;;  %v1029_v31 = vmul.f32 1.442695, %v976_v29 }
 0x258   : > { %v1504_v32 = vpop.eup %1503  ;;  %v1071_v33 = vadd.f32 1.0, %v1502_v30 }
 0x259   : > { %1134 = vst [vmem:[%s1772_s9 + $0x98] sm:$0xff] %v1504_v32  ;;  %1505 = vpow2.f32 %v1029_v31 }
 0x25a   : > { %1507 = vrcp.f32 %v1071_v33  ;;  %v930_v34 = vpop.f32.mrf.mxu2 }
 0x25b   : > { %v931_v36 = vadd.f32 %v1761_v21, %v930_v34 }
 0x25d   : > { %v977_v37 = vsub.f32 0.0, %v931_v36 }
 0x25f   : > { %v1506_v38 = vpop.eup %1505  ;;  %v1031_v39 = vmul.f32 1.442695, %v977_v37 }
 0x260   : > { %v1508_v40 = vpop.eup %1507  ;;  %v1072_v41 = vadd.f32 1.0, %v1506_v38 }
 0x261   : > { %1135 = vst [vmem:[%s1772_s9 + $0xa0] sm:$0xff] %v1508_v40  ;;  %1509 = vpow2.f32 %v1031_v39 }
 0x262   : > { %1511 = vrcp.f32 %v1072_v41  ;;  %v932_v42 = vpop.f32.mrf.mxu2 }
 0x263   : > { %v933_v43 = vadd.f32 %v1761_v21, %v932_v42 }
 0x265   : > { %v978_v44 = vsub.f32 0.0, %v933_v43 }
 0x267   : > { %v1510_v45 = vpop.eup %1509  ;;  %v1033_v46 = vmul.f32 1.442695, %v978_v44 }
 0x268   : > { %v1512_v47 = vpop.eup %1511  ;;  %v1073_v48 = vadd.f32 1.0, %v1510_v45 }
 0x269   : > { %1136 = vst [vmem:[%s1772_s9 + $0xa8] sm:$0xff] %v1512_v47  ;;  %1513 = vpow2.f32 %v1033_v46 }
 0x26a   : > { %1515 = vrcp.f32 %v1073_v48 }
 0x26f   : > { %v1514_v35 = vpop.eup %1513 }
 0x270   : > { %v1516_v49 = vpop.eup %1515  ;;  %v1074_v50 = vadd.f32 1.0, %v1514_v35  ;;  %v935_v51 = vpop.f32.mrf.mxu3 }
 0x271   : > { %1137 = vst [vmem:[%s1772_s9 + $0xb0] sm:$0xff] %v1516_v49  ;;  %v936_v52 = vadd.f32 %v1761_v21, %v935_v51 }
 0x272   : > { %1517 = vrcp.f32 %v1074_v50 }
 0x273   : > { %v979_v53 = vsub.f32 0.0, %v936_v52 }
 0x275   : > { %v1035_v54 = vmul.f32 1.442695, %v979_v53 }
 0x277   : > { %1519 = vpow2.f32 %v1035_v54 }
 0x278   : > { %v1518_v55 = vpop.eup %1517  ;;  %v937_v56 = vpop.f32.mrf.mxu3 }
 0x279   : > { %1138 = vst [vmem:[%s1772_s9 + $0xb8] sm:$0xff] %v1518_v55  ;;  %v938_v57 = vadd.f32 %v1761_v21, %v937_v56 }
 0x27b   : > { %v980_v58 = vsub.f32 0.0, %v938_v57 }
 0x27d   : > { %v1520_v59 = vpop.eup %1519  ;;  %v1037_v60 = vmul.f32 1.442695, %v980_v58 }
 0x27e   : > { %v1075_v61 = vadd.f32 1.0, %v1520_v59 }
 0x27f   : > { %1521 = vpow2.f32 %v1037_v60 }
 0x280   : > { %1523 = vrcp.f32 %v1075_v61  ;;  %v940_v62 = vpop.f32.mrf.mxu3 }
 0x281   : > { %v941_v63 = vadd.f32 %v1761_v21, %v940_v62 }
 0x283   : > { %v981_v0 = vsub.f32 0.0, %v941_v63 }
 0x285   : > { %v1522_v1 = vpop.eup %1521  ;;  %v1039_v2 = vmul.f32 1.442695, %v981_v0 }
 0x286   : > { %v1524_v3 = vpop.eup %1523  ;;  %v1076_v4 = vadd.f32 1.0, %v1522_v1 }
 0x287   : > { %1139 = vst [vmem:[%s1772_s9 + $0xc0] sm:$0xff] %v1524_v3  ;;  %1525 = vpow2.f32 %v1039_v2 }
 0x288   : > { %1527 = vrcp.f32 %v1076_v4  ;;  %v942_v5 = vpop.f32.mrf.mxu3 }
 0x289   : > { %v943_v6 = vadd.f32 %v1761_v21, %v942_v5 }
 0x28b   : > { %v982_v7 = vsub.f32 0.0, %v943_v6 }
 0x28d   : > { %v1526_v8 = vpop.eup %1525  ;;  %v1041_v9 = vmul.f32 1.442695, %v982_v7 }
 0x28e   : > { %v1528_v10 = vpop.eup %1527  ;;  %v1077_v11 = vadd.f32 1.0, %v1526_v8 }
 0x28f   : > { %1140 = vst [vmem:[%s1772_s9 + $0xc8] sm:$0xff] %v1528_v10  ;;  %1529 = vpow2.f32 %v1041_v9 }
 0x290   : > { %1531 = vrcp.f32 %v1077_v11  ;;  %v945_v12 = vpop.f32.mrf.mxu3 }
 0x291   : > { %v946_v13 = vadd.f32 %v1761_v21, %v945_v12 }
 0x293   : > { %v983_v19 = vsub.f32 0.0, %v946_v13 }
 0x295   : > { %v1530_v14 = vpop.eup %1529  ;;  %v1043_v15 = vmul.f32 1.442695, %v983_v19 }
 0x296   : > { %v1532_v16 = vpop.eup %1531  ;;  %v1078_v17 = vadd.f32 1.0, %v1530_v14 }
 0x297   : > { %1141 = vst [vmem:[%s1772_s9 + $0xd0] sm:$0xff] %v1532_v16  ;;  %1533 = vpow2.f32 %v1043_v15 }
 0x298   : > { %1535 = vrcp.f32 %v1078_v17  ;;  %v947_v18 = vpop.f32.mrf.mxu3 }
 0x299   : > { %v948_v20 = vadd.f32 %v1761_v21, %v947_v18 }
 0x29b   : > { %v984_v22 = vsub.f32 0.0, %v948_v20 }
 0x29d   : > { %v1534_v23 = vpop.eup %1533  ;;  %v1045_v24 = vmul.f32 1.442695, %v984_v22 }
 0x29e   : > { %v1536_v25 = vpop.eup %1535  ;;  %v1079_v26 = vadd.f32 1.0, %v1534_v23 }
 0x29f   : > { %1142 = vst [vmem:[%s1772_s9 + $0xd8] sm:$0xff] %v1536_v25  ;;  %1537 = vpow2.f32 %v1045_v24 }
 0x2a0   : > { %1539 = vrcp.f32 %v1079_v26  ;;  %v950_v27 = vpop.f32.mrf.mxu3 }
 0x2a1   : > { %v951_v28 = vadd.f32 %v1761_v21, %v950_v27 }
 0x2a3   : > { %v985_v29 = vsub.f32 0.0, %v951_v28 }
 0x2a5   : > { %v1538_v30 = vpop.eup %1537  ;;  %v1047_v31 = vmul.f32 1.442695, %v985_v29 }
 0x2a6   : > { %v1540_v32 = vpop.eup %1539  ;;  %v1080_v33 = vadd.f32 1.0, %v1538_v30 }
 0x2a7   : > { %1143 = vst [vmem:[%s1772_s9 + $0xe0] sm:$0xff] %v1540_v32  ;;  %1541 = vpow2.f32 %v1047_v31 }
 0x2a8   : > { %1543 = vrcp.f32 %v1080_v33  ;;  %v952_v34 = vpop.f32.mrf.mxu3 }
 0x2a9   : > { %v953_v36 = vadd.f32 %v1761_v21, %v952_v34 }
 0x2ab   : > { %v986_v37 = vsub.f32 0.0, %v953_v36 }
 0x2ad   : > { %v1542_v38 = vpop.eup %1541  ;;  %v1049_v39 = vmul.f32 1.442695, %v986_v37 }
 0x2ae   : > { %v1544_v40 = vpop.eup %1543  ;;  %v1081_v41 = vadd.f32 1.0, %v1542_v38 }
 0x2af   : > { %1144 = vst [vmem:[%s1772_s9 + $0xe8] sm:$0xff] %v1544_v40  ;;  %1545 = vpow2.f32 %v1049_v39 }
 0x2b0   : > { %1547 = vrcp.f32 %v1081_v41 }
 0x2b5   : > { %v1546_v42 = vpop.eup %1545 }
 0x2b6   : > { %v1548_v43 = vpop.eup %1547  ;;  %v1082_v44 = vadd.f32 1.0, %v1546_v42 }
 0x2b7   : > { %1145 = vst [vmem:[%s1772_s9 + $0xf0] sm:$0xff] %v1548_v43 }
 0x2b8   : > { %1549 = vrcp.f32 %v1082_v44 }
 0x2be   : > { %v1550_v45 = vpop.eup %1549 }
 0x2bf   : > { %1146 = vst [vmem:[%s1772_s9 + $0xf8] sm:$0xff] %v1550_v45 }
 0x2c0 PF: > { %s17_s24 = sadd.s32 1, %s1557_s24  }
 0x2c1   : > { %p14_p4 = scmp.ge.s32.totalorder %s17_s24, 4  }
 0x2c3   :  { %16 = sbr.rel (!%p14_p4) target bundleno = 1 (0x1), region = 78 }

</bundles_post_ra>
